<compile_context>
chip_gen: v7x
topology: tpu7x:2x2x1
jax: 0.10.0
libtpu: 0.0.40
codegen_flags: <defaults>
</compile_context>

<pallas_src>
import functools

import jax
import jax.numpy as jnp
from jax.experimental import pallas as pl
from jax.experimental.pallas import tpu as pltpu


_VMEM_BUDGET = 40 * 1024 * 1024   # target working set (fits v7x's 64 MiB VMEM)
_VMEM_LIMIT = 48 * 1024 * 1024    # scoped VMEM limit handed to Mosaic


def _se_block_kernel(x_ref, w1_ref, w2_ref, o_ref, *, inv_hw):
    x = x_ref[...]                                            # (Bt, C, HWp), orig dtype

    # Squeeze: spatial sum accumulated in f32, scaled by 1/(H*W).
    # (spatial padding is zero, so padded columns don't bias the mean)
    pooled = jnp.sum(x.astype(jnp.float32), axis=2) * inv_hw  # (Bt, C)

    # Excite: fc1 -> ReLU -> fc2 -> sigmoid, batched over Bt so the matmuls
    # have a real M dimension instead of N=1 matvecs on the MXU.
    w1 = w1_ref[...].astype(jnp.float32)                      # (C//r, C)
    w2 = w2_ref[...].astype(jnp.float32)                      # (C, C//r)
    h = jnp.einsum("bc,hc->bh", pooled, w1,
                   preferred_element_type=jnp.float32)        # (Bt, C//r)
    h = jnp.maximum(h, 0.0)
    s = jnp.einsum("bh,ch->bc", h, w2,
                   preferred_element_type=jnp.float32)        # (Bt, C)
    s = jax.nn.sigmoid(s)

    # Scale: gate the original-dtype slab (no second full-slab f32 copy).
    o_ref[...] = x * s.astype(x.dtype)[:, :, None]


def _choose_bt(B, slab_bytes):
    """Batch-block size: big tiles, ~4x slab within the VMEM budget, and
    (when possible) >= 2 grid steps so v7x's two TensorCores both get work."""
    max_bt = max(1, _VMEM_BUDGET // max(1, 4 * slab_bytes))
    if B >= 2:
        max_bt = min(max_bt, max(1, B // 2))
    max_bt = min(max_bt, B)
    bt = 1
    for d in range(1, max_bt + 1):
        if B % d == 0:
            bt = d
    return bt


def se_block(x, w1, w2):
    """x: (B, C, H, W) NCHW; w1: (C//r, C); w2: (C, C//r). Returns (B, C, H, W)."""
    B, C, H, W = x.shape
    HW = H * W
    HWp = ((HW + 127) // 128) * 128            # lane-dense last dim

    x_flat = x.reshape(B, C, HW)
    if HWp != HW:
        x_flat = jnp.pad(x_flat, ((0, 0), (0, 0), (0, HWp - HW)))

    slab_bytes = C * HWp * x.dtype.itemsize
    bt = _choose_bt(B, slab_bytes)
    # TODO(synk): add an HW-tiled two-pass fallback (pool+gate, then scale) for
    # activations where a single (C, HW) slab exceeds the VMEM budget on v7x.

    kernel = functools.partial(_se_block_kernel, inv_hw=1.0 / HW)

    out_flat = pl.pallas_call(
        kernel,
        out_shape=jax.ShapeDtypeStruct((B, C, HWp), x.dtype),
        grid=(B // bt,),
        in_specs=[
            pl.BlockSpec((bt, C, HWp), lambda b: (b, 0, 0)),
            pl.BlockSpec(w1.shape, lambda b: (0, 0)),
            pl.BlockSpec(w2.shape, lambda b: (0, 0)),
        ],
        out_specs=pl.BlockSpec((bt, C, HWp), lambda b: (b, 0, 0)),
        compiler_params=pltpu.CompilerParams(
            dimension_semantics=("parallel",),
            vmem_limit_bytes=_VMEM_LIMIT),
    )(x_flat, w1, w2)

    if HWp != HW:
        out_flat = out_flat[:, :, :HW]
    return out_flat.reshape(B, C, H, W)


def se_block_ref(x, w1, w2):
    # Pure-JAX reference mirroring the PyTorch forward (bias-free Linears).
    y = jnp.mean(x, axis=(2, 3))                      # (B, C)
    y = jnp.maximum(y @ w1.T, 0.0)                    # (B, C//r)
    y = jax.nn.sigmoid(y @ w2.T)                      # (B, C)
    return x * y[:, :, None, None]


if __name__ == "__main__":
    key = jax.random.PRNGKey(0)

    # Case 1: HW already a multiple of 128 (no padding path).
    B, C, H, W = 2, 16, 16, 16
    reduction = 8
    hidden = C // reduction
    kx, k1, k2, key = jax.random.split(key, 4)
    x = jax.random.normal(kx, (B, C, H, W), dtype=jnp.float32)
    w1 = jax.random.normal(k1, (hidden, C), dtype=jnp.float32) * 0.1
    w2 = jax.random.normal(k2, (C, hidden), dtype=jnp.float32) * 0.1
    out = jax.block_until_ready(se_block(x, w1, w2))
    ref = se_block_ref(x, w1, w2)
    assert jnp.allclose(out, ref, atol=1e-5, rtol=1e-5), "mismatch vs reference (case 1)"

    # Case 2: ragged spatial (HW=49 -> padded to 128) and odd batch.
    B2, C2, H2, W2 = 3, 8, 7, 7
    hidden2 = C2 // 4
    kx2, k12, k22 = jax.random.split(key, 3)
    x2 = jax.random.normal(kx2, (B2, C2, H2, W2), dtype=jnp.float32)
    w1b = jax.random.normal(k12, (hidden2, C2), dtype=jnp.float32) * 0.1
    w2b = jax.random.normal(k22, (C2, hidden2), dtype=jnp.float32) * 0.1
    out2 = jax.block_until_ready(se_block(x2, w1b, w2b))
    ref2 = se_block_ref(x2, w1b, w2b)
    assert jnp.allclose(out2, ref2, atol=1e-5, rtol=1e-5), "mismatch vs reference (case 2)"

    print("KERNEL_OK")
</pallas_src>

<mosaic_0001>
module attributes {stable_mosaic.version = 11 : i64} {
  func.func @_se_block_kernel(%arg0: i32, %arg1: memref<1x16x256xf32, #tpu.memory_space<vmem>>, %arg2: memref<2x16xf32, #tpu.memory_space<vmem>>, %arg3: memref<16x2xf32, #tpu.memory_space<vmem>>, %arg4: memref<1x16x256xf32, #tpu.memory_space<vmem>>) attributes {dimension_semantics = [#tpu.dimension_semantics<parallel>], iteration_bounds = array<i64: 2>, scalar_prefetch = 0 : i64, scratch_operands = 0 : i64, tpu.core_type = #tpu.core_type<tc>, window_params = [{transform_indices = @transform_0, window_bounds = array<i64: 1, 16, 256>}, {pipeline_mode = #tpu.pipeline_mode<synchronous>, transform_indices = @transform_1, window_bounds = array<i64: 2, 16>}, {pipeline_mode = #tpu.pipeline_mode<synchronous>, transform_indices = @transform_2, window_bounds = array<i64: 16, 2>}, {transform_indices = @transform_3, window_bounds = array<i64: 1, 16, 256>}]} {
    %c0 = arith.constant 0 : index
    %c0_0 = arith.constant 0 : index
    %c0_1 = arith.constant 0 : index
    %0 = vector.load %arg1[%c0, %c0_0, %c0_1] : memref<1x16x256xf32, #tpu.memory_space<vmem>>, vector<1x16x256xf32>
    %cst = arith.constant dense<0.000000e+00> : vector<1x16xf32>
    %1 = vector.multi_reduction <add>, %0, %cst [2] : vector<1x16x256xf32> to vector<1x16xf32>
    %cst_2 = arith.constant 3.906250e-03 : f32
    %2 = vector.broadcast %cst_2 : f32 to vector<1x16xf32>
    %3 = arith.mulf %1, %2 : vector<1x16xf32>
    %c0_3 = arith.constant 0 : index
    %c0_4 = arith.constant 0 : index
    %4 = vector.load %arg2[%c0_3, %c0_4] : memref<2x16xf32, #tpu.memory_space<vmem>>, vector<2x16xf32>
    %c0_5 = arith.constant 0 : index
    %c0_6 = arith.constant 0 : index
    %5 = vector.load %arg3[%c0_5, %c0_6] : memref<16x2xf32, #tpu.memory_space<vmem>>, vector<16x2xf32>
    "tpu.trace_start"() <{level = 10 : i32, message = "bc,hc->bh"}> : () -> ()
    %cst_7 = arith.constant dense<0.000000e+00> : vector<1x2xf32>
    %6 = tpu.matmul %3, %4, %cst_7 {dimension_numbers = #tpu.dot_dimension_numbers<[1], [1], [0], [0], [0, 0, 1, 0], [], []>} : vector<1x16xf32>, vector<2x16xf32>, vector<1x2xf32> -> vector<1x2xf32>
    "tpu.trace_stop"() : () -> ()
    %cst_8 = arith.constant 0.000000e+00 : f32
    %7 = vector.broadcast %cst_8 : f32 to vector<1x2xf32>
    %8 = arith.maximumf %6, %7 : vector<1x2xf32>
    "tpu.trace_start"() <{level = 10 : i32, message = "bh,ch->bc"}> : () -> ()
    %cst_9 = arith.constant dense<0.000000e+00> : vector<1x16xf32>
    %9 = tpu.matmul %8, %5, %cst_9 {dimension_numbers = #tpu.dot_dimension_numbers<[1], [1], [0], [0], [0, 0, 1, 0], [], []>} : vector<1x2xf32>, vector<16x2xf32>, vector<1x16xf32> -> vector<1x16xf32>
    "tpu.trace_stop"() : () -> ()
    %10 = arith.negf %9 : vector<1x16xf32>
    %11 = math.exp %10 : vector<1x16xf32>
    %cst_10 = arith.constant 1.000000e+00 : f32
    %12 = vector.broadcast %cst_10 : f32 to vector<1x16xf32>
    %13 = arith.addf %12, %11 : vector<1x16xf32>
    %14 = arith.divf %12, %13 : vector<1x16xf32>
    %15 = vector.shape_cast %14 : vector<1x16xf32> to vector<1x16x1xf32>
    %16 = vector.broadcast %15 : vector<1x16x1xf32> to vector<1x16x256xf32>
    %17 = arith.mulf %0, %16 : vector<1x16x256xf32>
    %c0_11 = arith.constant 0 : index
    %c0_12 = arith.constant 0 : index
    %c0_13 = arith.constant 0 : index
    %18 = vector.load %arg4[%c0_11, %c0_12, %c0_13] : memref<1x16x256xf32, #tpu.memory_space<vmem>>, vector<1x16x256xf32>
    tpu.vector_store %arg4[%c0_11, %c0_12, %c0_13], %17 {strides = array<i32>} : memref<1x16x256xf32, #tpu.memory_space<vmem>>, vector<1x16x256xf32>,
    return
  }
  func.func @transform_0(%arg0: i32) -> (i32, i32, i32) {
    %c0_i32 = arith.constant 0 : i32
    %c0_i32_0 = arith.constant 0 : i32
    %c0_i32_1 = arith.constant 0 : i32
    return %arg0, %c0_i32, %c0_i32_0 : i32, i32, i32
  }
  func.func @transform_1(%arg0: i32) -> (i32, i32) {
    %c0_i32 = arith.constant 0 : i32
    %c0_i32_0 = arith.constant 0 : i32
    %c0_i32_1 = arith.constant 0 : i32
    return %c0_i32, %c0_i32_0 : i32, i32
  }
  func.func @transform_2(%arg0: i32) -> (i32, i32) {
    %c0_i32 = arith.constant 0 : i32
    %c0_i32_0 = arith.constant 0 : i32
    %c0_i32_1 = arith.constant 0 : i32
    return %c0_i32, %c0_i32_0 : i32, i32
  }
  func.func @transform_3(%arg0: i32) -> (i32, i32, i32) {
    %c0_i32 = arith.constant 0 : i32
    %c0_i32_0 = arith.constant 0 : i32
    %c0_i32_1 = arith.constant 0 : i32
    return %arg0, %c0_i32, %c0_i32_0 : i32, i32, i32
  }
}

</mosaic_0001>

<bundles_post_ra>
// kernel: tpu_custom_call.1
= control target key start
LH: loop header
LB: loop body
LE: loop exit
PB: predicated region body
PF: predicated region fallthrough
CT: control target
= control target key end

     0   :  { %8 = vsyncpa [#allocation3], 0  ;;  %s903_s0 = inlined_call_operand.hbm [shape: f32[2,16,256], index: 0, kind: input, shape index: {}]   ;;  %s904_s1 = inlined_call_operand.vmem [shape: f32[2,16], index: 1, kind: input, shape index: {}]   ;;  %s905_s2 = inlined_call_operand.vmem [shape: f32[16,2], index: 2, kind: input, shape index: {}]   ;;  %s906_s3 = inlined_call_operand.hbm [shape: f32[2,16,256], index: 3, kind: output, shape index: {}]  }
   0x1   :  { %10 = vsyncpa [#allocation3 + $0x1], 0 }
   0x2   :  { %11 = vsyncpa [#allocation4], 0 }
   0x3   :  { %13 = vsyncpa [#allocation4 + $0x1], 0  ;;  %s715_s12 = smov 0   ;;  %s717_s13 = smov 0  }
   0x4   :  { %s719_s14 = smov 0   ;;  %s721_s15 = smov 0  }
   0x5 LB: > { %s736_s16 = sadd.s32 4294967295, %s684_s15   ;;  %s488_s17 = sadd.s32 4294967294, %s684_s15   ;;  %s684_s15 = sphi %s721_s15, %s919_s15   ;;  %s680_s14 = sphi %s719_s14, %s918_s14   ;;  %s676_s13 = sphi %s717_s13, %s917_s13   ;;  %s672_s12 = sphi %s715_s12, %s916_s12  }
   0x6   : > { %s740_s18 = sadd.s32 1, %s684_s15   ;;  %s26_s19 = sadd.s32 1, %s680_s14 }
   0x7   : > { %s23_s20 = ssub.s32 %s684_s15, %s740_s18  ;;  %p33_p0 = scmp.ne.s32.totalorder %s680_s14, %s676_s13 }
   0x8   : > { %p24_p1 = scmp.eq.s32.totalorder %s23_s20, 0  ;;  %p34_p2 = scmp.eq.s32.totalorder %s684_s15, 0 }
   0x9   : > { %p39_p3 = scmp.ne.s32.totalorder %s676_s13, %s672_s12  ;;  %p40_p4 = scmp.eq.s32.totalorder %s736_s16, 0 }
   0xa   : > { %s752_s21 = scalar_select %p24_p1, %s680_s14, %s26_s19  }
   0xb   : > { %p754_p5 = por %p34_p2, %p33_p0  ;;  %p758_p6 = por %p40_p4, %p39_p3 }
   0xc   : > { %p105_p7 = scmp.eq.s32.totalorder %s736_s16, 1  ;;  %p111_p8 = scmp.eq.s32.totalorder %s488_s17, 1 }
   0xd   : > { %p543_p10 = scmp.lt.s32.totalorder %s684_s15, 2  ;;  %s137_s26 = sand.u32 1, %s680_s14  }
   0xe   : > { %p765_p11 = por %p105_p7, %p33_p0  ;;  %p769_p12 = por %p111_p8, %p39_p3 }
   0xf   : > { %s508_s27 = sshll.u32 %s684_s15, 9  ;;  %s491_s28 = sshll.u32 %s137_s26, 5 }
  0x10   : > { %s910_s24 = scalar_select %p765_p11, 1, 0 }
  0x11   : > { %s911_s25 = scalar_select %p769_p12, 1, 0 }
  0x12   : > { %s778_s4 = scalar_lea.hbm %s903_s0, %s508_s27  ;;  %s141_s5 = scalar_lea.vmem [#allocation2], %s491_s28 }
  0x13   : > { %s148_s6 = sshll.u32 %s141_s5, 4  ;;  %p782_p13 = pnand %p543_p10, %p754_p5  ;;  %s786_s6 = int_to_ptr.vmem [resolvable:$true] %s148_s6 }
  0x14   : > { %s788_s8 = scalar_lea.sflag [#allocation3], %s137_s26  ;;  %s588_s9 = scalar_lea.hbm %s778_s4, 512 }
  0x15   : > { %p589_p0 = scmp.ne.s32.totalorder %s778_s4, %s588_s9  ;;  %p590_p1 = pneg %p782_p13 }
  0x16   : > { %s593_s17 = scalar_lea.hbm %s903_s0, 1024  ;;  %p594_p4 = scmp.lt.u32.totalorder %s778_s4, %s903_s0 }
  0x17   : > { %p591_p2 = pnand %p590_p1, %p589_p0  ;;  %p595_p5 = scmp.lt.u32.totalorder %s593_s17, %s588_s9 }
  0x18   : > { %p597_p8 = scmp.lt.u32.totalorder %s588_s9, %s778_s4 }
  0x19   : > { %p592_p3 = pneg %p591_p2  ;;  %p596_p7 = por %p595_p5, %p594_p4 }
  0x1b   : > { %p598_p10 = por %p597_p8, %p596_p7 }
  0x1d   : > { %p599_p9 = pnand %p598_p10, %p592_p3 }
  0x1f   : > { %602 = shalt.err (!%p599_p9)
}
  0x20   : > { %s603_s22 = scalar_lea.vmem %s786_s6, 512  ;;  %s686_s26 = smov [#allocation2]  }
  0x21   : > { %p604_p0 = scmp.ne.s32.totalorder %s786_s6, %s603_s22  ;;  %s608_s27 = sshll.u32 %s686_s26, 4  ;;  %s609_s27 = int_to_ptr.vmem [resolvable:$false] %s608_s27 }
  0x22   : > { %s610_s28 = scalar_lea.vmem %s609_s27, 1024  ;;  %p611_p11 = scmp.lt.s32.totalorder %s786_s6, %s609_s27 }
  0x23   : > { %p606_p2 = pnand %p604_p0, %p590_p1  ;;  %p612_p4 = scmp.lt.s32.totalorder %s610_s28, %s603_s22 }
  0x25   : > { %p607_p12 = pneg %p606_p2  ;;  %p613_p5 = por %p612_p4, %p611_p11 }
  0x27   : > { %p614_p7 = pnand %p613_p5, %p607_p12 }
  0x29   : > { %617 = shalt.err (!%p614_p7)
}
  0x2a   : > { %s687_s29 = smov 256   ;;  %s688_s30 = smov 16  }
  0x2b   : > { %538 = dma.hbm_to_vmem [thread:$0]  (!%p782_p13), %s778_s4, 512, %s786_s6, %s788_s8, %s687_s29, %s687_s29, %s688_s30  }
  0x2c   : > { %p494_p9 = scmp.ge.s32.totalorder %s684_s15, 1  ;;  %p156_p1 = scmp.lt.s32.totalorder %s684_s15, 3 }
  0x2e   : > { %p157_p3 = pnand %p494_p9, %p156_p1 }
  0x2f   : > { %s819_s5 = sand.u32 (!%p157_p3), 1, %s676_s13  }
  0x30   : > { %160 = sbr.rel (%p157_p3) target bundleno = 800 (0x320), region = 32  ;;  %s495_s9 = sshll.u32 (!%p157_p3), %s819_s5, 5 }
  0x31   : > { %s163_s10 = scalar_lea.sflag (!%p157_p3), [#allocation3], %s819_s5  ;;  %s166_s11 = scalar_lea.vmem (!%p157_p3), [#allocation2], %s495_s9 }
  0x37   : > { %663 = dma.done.wait (%p758_p6), %s163_s10, 512  }
  0x38   : > { %665 = vsyncadd (%p758_p6), %s163_s10, 4294966784  ;;  %v189_v0 = vld [vmem:[%s166_s11] sm:$0xff]  ;;  %v190_v1 = vld [vmem:[%s166_s11 + $0x8] sm:$0xff]  ;;  %v689_v6 = vmov 0.0   ;;  %vm219_vm0 = vcmask 130048   ;;  %vm690_vm1 = vmmov 0   ;;  %v206_v12 = vlaneseq }
  0x39   : > { %v829_v2 = vld [vmem:[%s166_s11 + $0x10] sm:$0xff]  ;;  %v193_v3 = vadd.f32 %v190_v1, %v189_v0  ;;  %v831_v4 = vld [vmem:[%s166_s11 + $0x18] sm:$0xff]  ;;  %515 = vmatprep.subr.mxu0 %v689_v6  ;;  %v201_v7 = vld [vmem:[%s904_s1] sm:$0x3]  ;;  %517 = vmatprep.mubr.msk.f32.mxu0 %vm690_vm1, %v689_v6  ;;  %vm296_vm2 = vcmask 15360   ;;  %v691_v10 = vmov 0.0|0.0  }
  0x3a   : > { %v196_v5 = vadd.f32 %v831_v4, %v829_v2  ;;  %516 = vmatpush3.xpose.msk.msra.mxu0 %vm219_vm0, %v201_v7  ;;  %524 = vmatprep.mubr.msk.f32.mxu1 %vm690_vm1, %v689_v6  ;;  %v202_v8 = vld [vmem:[%s905_s2] sm:$0xff]  ;;  %v203_v9 = vld [vmem:[%s905_s2 + $0x8] sm:$0xff]  ;;  %vm529_vm3 = vmpackc.low %vm296_vm2, %vm296_vm2  ;;  %v207_v13 = vand.u32 127, %v206_v12  ;;  %v209_v14 = vshrl.u32 %v206_v12, 7  ;;  %vm217_vm4 = vcmask 130112   ;;  %s188_s19 = scalar_lea.vmem [#allocation5], %s495_s9 }
  0x3b   : > { %194 = vadd.xlane.f32.xlu0 %v193_v3  ;;  %527 = vmatprep.subr.bf16.mxu1 %v691_v10  ;;  %v528_v11 = vpack.c.bf16 %v203_v9, %v202_v8  ;;  %s415_s20 = sshll.u32 %s188_s19, 4  ;;  %s509_s22 = sshll.u32 %s736_s16, 9  ;;  %s852_s20 = int_to_ptr.vmem [resolvable:$true] %s415_s20 }
  0x3c   : > { %v212_v15 = vadd.s32 4294967288, %v207_v13  ;;  %v210_v17 = vsub.s32 %v207_v13, %v209_v14  ;;  %v384_v33 = vsub.s32 0, %v209_v14  ;;  %s857_s28 = scalar_lea.hbm %s906_s3, %s509_s22  ;;  %s402_s16 = scalar_lea.sflag [#allocation4], %s819_s5 }
  0x3d   : > { %530 = vmatpush3.bf16.xpose.msk.msra.mxu1 %vm529_vm3, %v528_v11  ;;  %s618_s29 = scalar_lea.vmem %s852_s20, 512  ;;  %p913_p11 = scmp.ne.s32.totalorder %s910_s24, 0 }
  0x3e   : > { %v215_v19 = vsub.s32 %v212_v15, %v209_v14  ;;  %p619_p6 = scmp.ne.s32.totalorder %s852_s20, %s618_s29  ;;  %s692_s30 = smov [#allocation5]  }
  0x3f   : > { %197 = vadd.xlane.f32.xlu0 %v196_v5  ;;  %s622_s9 = sshll.u32 %s692_s30, 4  ;;  %s623_s9 = int_to_ptr.vmem [resolvable:$false] %s622_s9 }
  0x40   : > { %p620_p12 = pnand %p619_p6, %p913_p11  ;;  %s624_s10 = scalar_lea.vmem %s623_s9, 1024 }
  0x41   : > { %p625_p8 = scmp.lt.s32.totalorder %s852_s20, %s623_s9  ;;  %p626_p10 = scmp.lt.s32.totalorder %s624_s10, %s618_s29 }
  0x42   : > { %p621_p13 = pneg %p620_p12 }
  0x43   : > { %p627_p0 = por %p626_p10, %p625_p8 }
  0x45   : > { %p628_p2 = pnand %p627_p0, %p621_p13 }
  0xc8   : > { %v195_v16 = vpop.xlane.xlu0 %194 }
  0xc9   : > { %v199_v18 = vmul.f32 0.00390625, %v195_v16 }
  0xcb   : > { %v211_v22 = vrot.slane %v199_v18, %v210_v17 }
  0xcc   : > { %v198_v20 = vpop.xlane.xlu0 %197 }
  0xcd   : > { %v200_v21 = vmul.f32 0.00390625, %v198_v20 }
  0xcf   : > { %v216_v23 = vrot.slane %v200_v21, %v215_v19 }
  0xd1   : > { %v218_v24 = vsel %vm217_vm4, %v216_v23, %v211_v22 }
  0xd2   : > { %518 = vmatmul.mubr.msk.f32.vlgmr.msra.gmra.mrb[0].mxu0 %vm219_vm0, %v218_v24 }
 0x1a5   : > { %v291_v25 = vpop.f32.mrb[0].mxu0 }
 0x1a6   : > { %v295_v26 = vmax.f32 %v291_v25, 0.0  ;;  %v519_v27 = vpop.f32.mrb[1].mxu0 }
 0x1a8   : > { %525 = vmatmul.mubr.msk.f32.vlgmr.msra.gmra.mrb[0].mxu1 %vm296_vm2, %v295_v26 }
 0x27b   : > { %v372_v28 = vpop.f32.mrb[0].mxu1 }
 0x27c   : > { %v502_v29 = vmul.f32 -1.442695, %v372_v28  ;;  %v526_v30 = vpop.f32.mrb[1].mxu1 }
 0x27e   : > { %584 = vpow2.f32 %v502_v29 }
 0x288   : > { %v585_v31 = vpop.eup %584 }
 0x289   : > { %v379_v32 = vadd.f32 1.0, %v585_v31 }
 0x28b   : > { %586 = vrcp.f32 %v379_v32 }
 0x295   : > { %v587_v34 = vpop.eup %586 }
 0x296   : > { %v385_v35 = vrot.slane %v587_v34, %v384_v33 }
 0x298   : > { %387 = vbcast.lane.b32.xlu1 %v385_v35, 256 }
 0x29c   : > { %391 = vbcast.lane.b32.xlu1 %v385_v35, 264 }
 0x30a   : > { %v388_v36 = vpop.permute.xlu1 %387 }
 0x30b   : > { %v393_v37 = vmul.f32 %v388_v36, %v189_v0  ;;  %v394_v38 = vmul.f32 %v388_v36, %v190_v1 }
 0x30d   : > { %397 = vst [vmem:[%s188_s19] sm:$0xff] %v393_v37  ;;  %398 = vst [vmem:[%s188_s19 + $0x8] sm:$0xff] %v394_v38 }
 0x30e   : > { %v392_v39 = vpop.permute.xlu1 %391 }
 0x30f   : > { %v395_v40 = vmul.f32 %v392_v39, %v829_v2  ;;  %v396_v41 = vmul.f32 %v392_v39, %v831_v4 }
 0x311   : > { %399 = vst [vmem:[%s188_s19 + $0x10] sm:$0xff] %v395_v40  ;;  %400 = vst [vmem:[%s188_s19 + $0x18] sm:$0xff] %v396_v41 }
 0x312   : > { %631 = shalt.err (!%p628_p2)
}
 0x313   : > { %s632_s11 = scalar_lea.hbm %s857_s28, 512  ;;  %s636_s23 = scalar_lea.hbm %s906_s3, 1024 }
 0x314   : > { %p633_p4 = scmp.ne.s32.totalorder %s857_s28, %s632_s11  ;;  %p637_p9 = scmp.lt.u32.totalorder %s857_s28, %s906_s3 }
 0x315   : > { %p638_p1 = scmp.lt.u32.totalorder %s636_s23, %s632_s11  ;;  %p640_p6 = scmp.lt.u32.totalorder %s632_s11, %s857_s28 }
 0x316   : > { %p634_p5 = pnand %p633_p4, %p913_p11 }
 0x317   : > { %p639_p3 = por %p638_p1, %p637_p9 }
 0x318   : > { %p635_p7 = pneg %p634_p5 }
 0x319   : > { %p641_p12 = por %p640_p6, %p639_p3 }
 0x31b   : > { %p642_p13 = pnand %p641_p12, %p635_p7 }
 0x31d   : > { %645 = shalt.err (!%p642_p13)
}
 0x31e   : > { %s693_s17 = smov 256   ;;  %s694_s19 = smov 16  }
 0x31f   : > { %533 = dma.vmem_to_hbm [thread:$0]  (%p913_p11), %s852_s20, 512, %s857_s28, %s402_s16, %s693_s17, %s693_s17, %s694_s19  }
 0x320 PF: > { %s430_s22 = sand.u32 1, %s672_s12   ;;  %p914_p8 = scmp.ne.s32.totalorder %s911_s25, 0 }
 0x321   : > { %p915_p10 = scmp.ge.s32.totalorder %s684_s15, 2  ;;  %s431_s26 = scalar_lea.sflag [#allocation4], %s430_s22 }
 0x323   : > { %p540_p0 = pnand %p915_p10, %p914_p8 }
 0x325   : > { %667 = dma.done.wait (!%p540_p0), %s431_s26, 512  }
 0x326   : > { %669 = vsyncadd (!%p540_p0), %s431_s26, 4294966784  ;;  %p16_p2 = scmp.ge.s32.totalorder %s740_s18, 4   ;;  %s916_s12 = smov %s676_s13 }
 0x327   : > { %s917_s13 = smov %s680_s14  ;;  %s918_s14 = smov %s752_s21 }
 0x328   : > { %s919_s15 = smov %s740_s18  ;;  %18 = sbr.rel (!%p16_p2) target bundleno = 5 (0x5), region = 77 }
 0x32f   :  { %436 = vsyncpa [#allocation3], 1 }
 0x330   :  { %438 = vsyncpa [#allocation3 + $0x1], 1 }
 0x331   :  { %439 = vsyncpa [#allocation4], 1 }
 0x332   :  { %441 = vsyncpa [#allocation4 + $0x1], 1 }

</bundles_post_ra>
